<compile_context>
chip_gen: v5e
topology: v5e:2x2
jax: 0.10.0
libtpu: 0.0.40
codegen_flags: <defaults>
</compile_context>

<pallas_src>
import jax
import jax.numpy as jnp
from jax.experimental import pallas as pl
from jax.experimental.pallas import tpu as pltpu


def _round_up(x, m):
    return ((x + m - 1) // m) * m


def _cdiv(a, b):
    return (a + b - 1) // b


def _min_sublane(dtype):
    return {1: 32, 2: 16, 4: 8}[jnp.dtype(dtype).itemsize]


def _vmem_ceiling_bytes():
    """Usable VMEM budget (3/4 of physical, leaving Mosaic headroom)."""
    cap = None
    try:
        info = pltpu.get_tpu_info()
        cap = getattr(info, "vmem_capacity_bytes", None)
    except Exception:
        cap = None
    if not cap:
        cap = 64 << 20  # conservative (v7x-sized) default if query unavailable
    return int(cap) * 3 // 4


# ----------------------------- kernels --------------------------------------


def _mlp_resident_kernel(x_ref, w1_ref, w2_ref, o_ref):
    # dot1: bf16 x bf16 -> f32 accumulation on the MXU.
    h = jnp.dot(x_ref[...], w1_ref[...], preferred_element_type=jnp.float32)
    # dot2: feed the MXU in bf16 (accumulation stays f32); h never hits HBM.
    out = jnp.dot(h.astype(w2_ref.dtype), w2_ref[...],
                  preferred_element_type=jnp.float32)
    o_ref[...] = out.astype(o_ref.dtype)


def _mlp_hidden_tiled_kernel(x_ref, w1_ref, w2_ref, o_ref, acc_ref):
    # Grid = (batch tile i, hidden chunk j); hidden is the reduction axis of
    # the second matmul, accumulated in an f32 VMEM scratch.
    j = pl.program_id(1)

    @pl.when(j == 0)
    def _():
        acc_ref[...] = jnp.zeros_like(acc_ref)

    h = jnp.dot(x_ref[...], w1_ref[...], preferred_element_type=jnp.float32)
    acc_ref[...] += jnp.dot(h.astype(w2_ref.dtype), w2_ref[...],
                            preferred_element_type=jnp.float32)

    @pl.when(j == pl.num_programs(1) - 1)
    def _():
        o_ref[...] = acc_ref[...].astype(o_ref.dtype)


# ----------------------------- wrapper ---------------------------------------


def prepare_weights(w1_t, w2_t, compute_dtype=jnp.bfloat16):
    """One-time weight preparation (call at weight-load time, NOT per forward).

    w1_t: (input_dim, hidden_dim)   == hidden_layer.weight.T
    w2_t: (hidden_dim, output_dim)  == output_layer.weight.T
    Pads every lane dimension to a multiple of 128 (exact for bias-free
    matmuls) and casts to the MXU-native compute dtype.
    """
    # TODO(synk): optional fp8 weight path on v7x (weights fp8, x bf16) for
    # inference deployments that tolerate it.
    input_dim, hidden_dim = w1_t.shape
    hidden_dim2, output_dim = w2_t.shape
    assert hidden_dim == hidden_dim2
    kp = _round_up(input_dim, 128)
    hp = _round_up(hidden_dim, 128)
    np_ = _round_up(output_dim, 128)
    w1_p = jnp.zeros((kp, hp), compute_dtype).at[:input_dim, :hidden_dim].set(
        w1_t.astype(compute_dtype))
    w2_p = jnp.zeros((hp, np_), compute_dtype).at[:hidden_dim, :output_dim].set(
        w2_t.astype(compute_dtype))
    return dict(w1=w1_p, w2=w2_p, input_dim=int(input_dim),
                hidden_dim=int(hidden_dim), output_dim=int(output_dim),
                compute_dtype=jnp.dtype(compute_dtype))


def ann_forward(x, params, *, block_m=None, block_h=None,
                force_hidden_tiling=False):
    """out = (x @ w1_t) @ w2_t  — equivalent to ANNModel.forward."""
    w1_p, w2_p = params["w1"], params["w2"]
    input_dim = params["input_dim"]
    output_dim = params["output_dim"]
    cdtype = params["compute_dtype"]
    kp, hp = w1_p.shape
    _, np_ = w2_p.shape

    batch = x.shape[0]
    assert x.shape == (batch, input_dim)
    out_dtype = x.dtype
    cbytes = jnp.dtype(cdtype).itemsize
    obytes = jnp.dtype(out_dtype).itemsize
    min_sub = _min_sublane(cdtype)

    ceiling = _vmem_ceiling_bytes()
    if block_m is None:
        # 512-wide tiles reach ~85% of HBM roofline on v5e/v6e (128 MiB VMEM);
        # 256 on v7x (64 MiB VMEM).
        block_m = 512 if ceiling >= (90 << 20) else 256

    # ---- tile sizing (exact VMEM accounting, incl. the f32 intermediate) ----
    def resident_bytes(tm_):
        w = (kp * hp + hp * np_) * cbytes          # single-buffered weights
        tiles = (2 * tm_ * kp * cbytes + 2 * tm_ * np_ * obytes
                 + tm_ * hp * 4 + tm_ * hp * cbytes)
        return w + tiles

    def tiled_bytes(tm_, th_):
        return (2 * tm_ * kp * cbytes + 2 * kp * th_ * cbytes
                + 2 * th_ * np_ * cbytes + 2 * tm_ * np_ * obytes
                + tm_ * np_ * 4 + tm_ * th_ * 4 + tm_ * th_ * cbytes)

    tm0 = min(_round_up(block_m, min_sub), _round_up(batch, min_sub))
    tm = tm0
    use_tiled = bool(force_hidden_tiling)
    if not use_tiled:
        while resident_bytes(tm) > ceiling and tm > min_sub:
            tm = max(min_sub, _round_up(tm // 2, min_sub))
        if resident_bytes(tm) > ceiling:
            use_tiled = True
            tm = tm0

    th = None
    if use_tiled:
        def _pick_th(desired):
            d = min(hp, max(128, (desired // 128) * 128))
            while d > 128 and hp % d != 0:   # th must divide hp exactly
                d -= 128
            return max(128, d)

        th = _pick_th(block_h if block_h is not None else 512)
        while tiled_bytes(tm, th) > ceiling and th > 128:
            th = _pick_th(th - 128)
        while tiled_bytes(tm, th) > ceiling and tm > min_sub:
            tm = max(min_sub, _round_up(tm // 2, min_sub))
        # TODO(synk): if even (tm=min_sub, th=128) overflows VMEM, the K/N axes
        # of the weights would also need tiling; not needed at these shapes.

    # Megacore: make sure the "parallel" batch axis has >= 2 tiles when the
    # batch allows it (otherwise one v7x TensorCore idles).
    bp = _round_up(batch, tm)
    if bp // tm < 2 and batch >= 2 * min_sub:
        tm = _round_up(_cdiv(batch, 2), min_sub)
        bp = _round_up(batch, tm)
    grid_m = bp // tm

    # ---- input padding only when actually required --------------------------
    x_c = x.astype(cdtype)
    if (bp, kp) != (batch, input_dim):
        x_p = jnp.zeros((bp, kp), cdtype).at[:batch, :input_dim].set(x_c)
    else:
        x_p = x_c

    flops = 2 * bp * kp * hp + 2 * bp * hp * np_
    bytes_accessed = (bp * kp * cbytes + (kp * hp + hp * np_) * cbytes
                      + bp * np_ * obytes)
    cost = pl.CostEstimate(flops=int(flops), transcendentals=0,
                           bytes_accessed=int(bytes_accessed))

    if not use_tiled:
        need = resident_bytes(tm)
        vmem_limit = int(max(16 << 20, min(ceiling, need + (4 << 20))))

        def run(single_buffer_weights):
            def wspec(shape):
                if single_buffer_weights and hasattr(pl, "Buffered"):
                    try:
                        # Constant index_map -> weights stay resident; one
                        # buffer is enough (double-buffering buys nothing).
                        return pl.BlockSpec(shape, lambda i: (0, 0),
                                            pipeline_mode=pl.Buffered(1))
                    except Exception:
                        pass
                return pl.BlockSpec(shape, lambda i: (0, 0))

            return pl.pallas_call(
                _mlp_resident_kernel,
                out_shape=jax.ShapeDtypeStruct((bp, np_), out_dtype),
                grid_spec=pltpu.PrefetchScalarGridSpec(
                    num_scalar_prefetch=0,
                    grid=(grid_m,),
                    in_specs=[
                        pl.BlockSpec((tm, kp), lambda i: (i, 0)),
                        wspec((kp, hp)),
                        wspec((hp, np_)),
                    ],
                    out_specs=pl.BlockSpec((tm, np_), lambda i: (i, 0)),
                ),
                compiler_params=pltpu.CompilerParams(
                    dimension_semantics=("parallel",),
                    vmem_limit_bytes=vmem_limit,
                ),
                cost_estimate=cost,
            )(x_p, w1_p, w2_p)

        try:
            out_p = run(True)
        except Exception:
            # Robustness: if this JAX build rejects Buffered(1) on an input
            # spec, fall back to default double-buffered weights.
            out_p = run(False)
    else:
        grid_h = hp // th
        need = tiled_bytes(tm, th)
        vmem_limit = int(max(16 << 20, min(ceiling, need + (4 << 20))))
        out_p = pl.pallas_call(
            _mlp_hidden_tiled_kernel,
            out_shape=jax.ShapeDtypeStruct((bp, np_), out_dtype),
            grid_spec=pltpu.PrefetchScalarGridSpec(
                num_scalar_prefetch=0,
                grid=(grid_m, grid_h),
                in_specs=[
                    pl.BlockSpec((tm, kp), lambda i, j: (i, 0)),
                    pl.BlockSpec((kp, th), lambda i, j: (0, j)),
                    pl.BlockSpec((th, np_), lambda i, j: (j, 0)),
                ],
                out_specs=pl.BlockSpec((tm, np_), lambda i, j: (i, 0)),
                scratch_shapes=[pltpu.VMEM((tm, np_), jnp.float32)],
            ),
            compiler_params=pltpu.CompilerParams(
                dimension_semantics=("parallel", "arbitrary"),
                vmem_limit_bytes=vmem_limit,
            ),
            cost_estimate=cost,
        )(x_p, w1_p, w2_p)

    if (bp, np_) != (batch, output_dim):
        out_p = out_p[:batch, :output_dim]
    return out_p


if __name__ == "__main__":
    # Small shapes consistent with the module: a plain MLP on flat features.
    batch, input_dim, hidden_dim, output_dim = 8, 32, 64, 16

    key = jax.random.PRNGKey(0)
    kx, k1, k2 = jax.random.split(key, 3)

    x = jax.random.normal(kx, (batch, input_dim), dtype=jnp.float32)
    # PyTorch stores Linear weights as (out, in); the kernel consumes the
    # transposed (in, out) layout, matching ANNModel.get_weights().
    w1_t = (jax.random.normal(k1, (input_dim, hidden_dim), dtype=jnp.float32)
            * (1.0 / jnp.sqrt(input_dim)))
    w2_t = (jax.random.normal(k2, (hidden_dim, output_dim), dtype=jnp.float32)
            * (1.0 / jnp.sqrt(hidden_dim)))

    params = prepare_weights(w1_t, w2_t)     # one-time pad + bf16 cast
    out = ann_forward(x, params)
    jax.block_until_ready(out)
    assert out.shape == (batch, output_dim)

    # Matching-precision reference (bf16 MXU feeds, f32 accumulation).
    bf = jnp.bfloat16
    h_ref = jnp.dot(x.astype(bf), w1_t.astype(bf),
                    preferred_element_type=jnp.float32)
    ref = jnp.dot(h_ref.astype(bf), w2_t.astype(bf),
                  preferred_element_type=jnp.float32)
    assert jnp.allclose(out, ref, atol=1e-2, rtol=1e-2)
    # Loose sanity check against pure-f32 math.
    ref32 = (x @ w1_t) @ w2_t
    assert jnp.allclose(out, ref32, atol=1e-1, rtol=1e-1)

    # Also exercise the hidden-tiled (large-weight) fallback path so both code
    # paths are validated on hardware.
    hidden_big = 256
    w1b = (jax.random.normal(k1, (input_dim, hidden_big), dtype=jnp.float32)
           * (1.0 / jnp.sqrt(input_dim)))
    w2b = (jax.random.normal(k2, (hidden_big, output_dim), dtype=jnp.float32)
           * (1.0 / jnp.sqrt(hidden_big)))
    params_b = prepare_weights(w1b, w2b)
    out_b = ann_forward(x, params_b, force_hidden_tiling=True, block_h=128)
    jax.block_until_ready(out_b)
    hb = jnp.dot(x.astype(bf), w1b.astype(bf),
                 preferred_element_type=jnp.float32)
    ref_b = jnp.dot(hb.astype(bf), w2b.astype(bf),
                    preferred_element_type=jnp.float32)
    assert out_b.shape == (batch, output_dim)
    assert jnp.allclose(out_b, ref_b, atol=1e-2, rtol=1e-2)

    print("KERNEL_OK")
</pallas_src>

<mosaic_0001>
module attributes {stable_mosaic.version = 11 : i64} {
  func.func @_mlp_resident_kernel(%arg0: i32, %arg1: memref<16x128xbf16, #tpu.memory_space<vmem>>, %arg2: memref<128x128xbf16, #tpu.memory_space<vmem>>, %arg3: memref<128x128xbf16, #tpu.memory_space<vmem>>, %arg4: memref<16x128xf32, #tpu.memory_space<vmem>>) attributes {dimension_semantics = [#tpu.dimension_semantics<parallel>], iteration_bounds = array<i64: 1>, scalar_prefetch = 0 : i64, scratch_operands = 0 : i64, tpu.core_type = #tpu.core_type<tc>, window_params = [{transform_indices = @transform_0, window_bounds = array<i64: 16, 128>}, {pipeline_mode = #tpu.pipeline_mode<synchronous>, transform_indices = @transform_1, window_bounds = array<i64: 128, 128>}, {pipeline_mode = #tpu.pipeline_mode<synchronous>, transform_indices = @transform_2, window_bounds = array<i64: 128, 128>}, {transform_indices = @transform_3, window_bounds = array<i64: 16, 128>}]} {
    %c0 = arith.constant 0 : index
    %c0_0 = arith.constant 0 : index
    %0 = vector.load %arg1[%c0, %c0_0] : memref<16x128xbf16, #tpu.memory_space<vmem>>, vector<16x128xbf16>
    %c0_1 = arith.constant 0 : index
    %c0_2 = arith.constant 0 : index
    %1 = vector.load %arg2[%c0_1, %c0_2] : memref<128x128xbf16, #tpu.memory_space<vmem>>, vector<128x128xbf16>
    %cst = arith.constant dense<0.000000e+00> : vector<16x128xf32>
    %2 = tpu.matmul %0, %1, %cst {dimension_numbers = #tpu.dot_dimension_numbers<[1], [0], [0], [1], [0, 0, 1, 1], [], []>} : vector<16x128xbf16>, vector<128x128xbf16>, vector<16x128xf32> -> vector<16x128xf32>
    %3 = arith.truncf %2 : vector<16x128xf32> to vector<16x128xbf16>
    %c0_3 = arith.constant 0 : index
    %c0_4 = arith.constant 0 : index
    %4 = vector.load %arg3[%c0_3, %c0_4] : memref<128x128xbf16, #tpu.memory_space<vmem>>, vector<128x128xbf16>
    %cst_5 = arith.constant dense<0.000000e+00> : vector<16x128xf32>
    %5 = tpu.matmul %3, %4, %cst_5 {dimension_numbers = #tpu.dot_dimension_numbers<[1], [0], [0], [1], [0, 0, 1, 1], [], []>} : vector<16x128xbf16>, vector<128x128xbf16>, vector<16x128xf32> -> vector<16x128xf32>
    %c0_6 = arith.constant 0 : index
    %c0_7 = arith.constant 0 : index
    %6 = vector.load %arg4[%c0_6, %c0_7] : memref<16x128xf32, #tpu.memory_space<vmem>>, vector<16x128xf32>
    tpu.vector_store %arg4[%c0_6, %c0_7], %5 {strides = array<i32>} : memref<16x128xf32, #tpu.memory_space<vmem>>, vector<16x128xf32>,
    return
  }
  func.func @transform_0(%arg0: i32) -> (i32, i32) {
    %c0_i32 = arith.constant 0 : i32
    %c0_i32_0 = arith.constant 0 : i32
    return %arg0, %c0_i32 : i32, i32
  }
  func.func @transform_1(%arg0: i32) -> (i32, i32) {
    %c0_i32 = arith.constant 0 : i32
    %c0_i32_0 = arith.constant 0 : i32
    %c0_i32_1 = arith.constant 0 : i32
    return %c0_i32, %c0_i32_0 : i32, i32
  }
  func.func @transform_2(%arg0: i32) -> (i32, i32) {
    %c0_i32 = arith.constant 0 : i32
    %c0_i32_0 = arith.constant 0 : i32
    %c0_i32_1 = arith.constant 0 : i32
    return %c0_i32, %c0_i32_0 : i32, i32
  }
  func.func @transform_3(%arg0: i32) -> (i32, i32) {
    %c0_i32 = arith.constant 0 : i32
    %c0_i32_0 = arith.constant 0 : i32
    return %arg0, %c0_i32 : i32, i32
  }
}

module attributes {stable_mosaic.version = 11 : i64} {
  func.func @_mlp_resident_kernel(%arg0: i32, %arg1: memref<16x128xbf16, #tpu.memory_space<vmem>>, %arg2: memref<128x128xbf16, #tpu.memory_space<vmem>>, %arg3: memref<128x128xbf16, #tpu.memory_space<vmem>>, %arg4: memref<16x128xf32, #tpu.memory_space<vmem>>) attributes {dimension_semantics = [#tpu.dimension_semantics<parallel>], iteration_bounds = array<i64: 1>, scalar_prefetch = 0 : i64, scratch_operands = 0 : i64, tpu.core_type = #tpu.core_type<tc>, window_params = [{transform_indices = @transform_0, window_bounds = array<i64: 16, 128>}, {pipeline_mode = #tpu.pipeline_mode<synchronous>, transform_indices = @transform_1, window_bounds = array<i64: 128, 128>}, {pipeline_mode = #tpu.pipeline_mode<synchronous>, transform_indices = @transform_2, window_bounds = array<i64: 128, 128>}, {transform_indices = @transform_3, window_bounds = array<i64: 16, 128>}]} {
    %c0 = arith.constant 0 : index
    %c0_0 = arith.constant 0 : index
    %0 = vector.load %arg1[%c0, %c0_0] : memref<16x128xbf16, #tpu.memory_space<vmem>>, vector<16x128xbf16>
    %c0_1 = arith.constant 0 : index
    %c0_2 = arith.constant 0 : index
    %1 = vector.load %arg2[%c0_1, %c0_2] : memref<128x128xbf16, #tpu.memory_space<vmem>>, vector<128x128xbf16>
    %cst = arith.constant dense<0.000000e+00> : vector<16x128xf32>
    %2 = tpu.matmul %0, %1, %cst {dimension_numbers = #tpu.dot_dimension_numbers<[1], [0], [0], [1], [0, 0, 1, 1], [], []>} : vector<16x128xbf16>, vector<128x128xbf16>, vector<16x128xf32> -> vector<16x128xf32>
    %3 = arith.truncf %2 : vector<16x128xf32> to vector<16x128xbf16>
    %c0_3 = arith.constant 0 : index
    %c0_4 = arith.constant 0 : index
    %4 = vector.load %arg3[%c0_3, %c0_4] : memref<128x128xbf16, #tpu.memory_space<vmem>>, vector<128x128xbf16>
    %cst_5 = arith.constant dense<0.000000e+00> : vector<16x128xf32>
    %5 = tpu.matmul %3, %4, %cst_5 {dimension_numbers = #tpu.dot_dimension_numbers<[1], [0], [0], [1], [0, 0, 1, 1], [], []>} : vector<16x128xbf16>, vector<128x128xbf16>, vector<16x128xf32> -> vector<16x128xf32>
    %c0_6 = arith.constant 0 : index
    %c0_7 = arith.constant 0 : index
    %6 = vector.load %arg4[%c0_6, %c0_7] : memref<16x128xf32, #tpu.memory_space<vmem>>, vector<16x128xf32>
    tpu.vector_store %arg4[%c0_6, %c0_7], %5 {strides = array<i32>} : memref<16x128xf32, #tpu.memory_space<vmem>>, vector<16x128xf32>,
    return
  }
  func.func @transform_0(%arg0: i32) -> (i32, i32) {
    %c0_i32 = arith.constant 0 : i32
    %c0_i32_0 = arith.constant 0 : i32
    return %arg0, %c0_i32 : i32, i32
  }
  func.func @transform_1(%arg0: i32) -> (i32, i32) {
    %c0_i32 = arith.constant 0 : i32
    %c0_i32_0 = arith.constant 0 : i32
    %c0_i32_1 = arith.constant 0 : i32
    return %c0_i32, %c0_i32_0 : i32, i32
  }
  func.func @transform_2(%arg0: i32) -> (i32, i32) {
    %c0_i32 = arith.constant 0 : i32
    %c0_i32_0 = arith.constant 0 : i32
    %c0_i32_1 = arith.constant 0 : i32
    return %c0_i32, %c0_i32_0 : i32, i32
  }
  func.func @transform_3(%arg0: i32) -> (i32, i32) {
    %c0_i32 = arith.constant 0 : i32
    %c0_i32_0 = arith.constant 0 : i32
    return %arg0, %c0_i32 : i32, i32
  }
}

</mosaic_0001>

<bundles_post_ra>
// kernel: tpu_custom_call.1
= control target key start
LH: loop header
LB: loop body
LE: loop exit
PB: predicated region body
PF: predicated region fallthrough
CT: control target
= control target key end

     0   :  { %8 = vsyncpa [#allocation3], 0  ;;  %s484_s0 = inlined_call_operand.hbm [shape: bf16[16,128], index: 0, kind: input, shape index: {}]   ;;  %s485_s1 = inlined_call_operand.hbm [shape: bf16[128,128], index: 1, kind: input, shape index: {}]   ;;  %s486_s2 = inlined_call_operand.hbm [shape: bf16[128,128], index: 2, kind: input, shape index: {}]   ;;  %s487_s3 = inlined_call_operand.hbm [shape: f32[16,128], index: 3, kind: output, shape index: {}]  }
   0x1   :  { %9 = vsyncpa [#allocation6], 0 }
   0x2   :  { %10 = vsyncpa [#allocation4], 0  ;;  %s28_s14 = sshll.u32 %s485_s1, 4  ;;  %s444_s15 = smov [#allocation5]   ;;  %s29_s14 = int_to_ptr.hbm [resolvable:$true] %s28_s14 }
   0x3   :  { %s30_s16 = sshll.u32 %s444_s15, 4  ;;  %s15_s19 = sshll.u32 %s484_s0, 4  ;;  %s31_s16 = int_to_ptr.vmem [resolvable:$true] %s30_s16  ;;  %s16_s19 = int_to_ptr.hbm [resolvable:$true] %s15_s19 }
   0x4   :  { %s445_s20 = smov 64   ;;  %s446_s21 = smov 4  }
   0x5   :  { %36 = dma.hbm_to_vmem [thread:$0]  %s29_s14, 1024, %s31_s16, [#allocation6], %s445_s20, %s445_s20, %s446_s21  }
   0x6   :  { %s447_s22 = smov [#allocation2]   ;;  %s41_s26 = sshll.u32 %s486_s2, 4  ;;  %s42_s26 = int_to_ptr.hbm [resolvable:$true] %s41_s26 }
   0x7   :  { %s17_s23 = sshll.u32 %s447_s22, 4  ;;  %s448_s1 = smov [#allocation7]   ;;  %s18_s23 = int_to_ptr.vmem [resolvable:$true] %s17_s23 }
   0x8   :  { %23 = dma.hbm_to_vmem [thread:$0]  %s16_s19, 128, %s18_s23, [#allocation3], %s445_s20, %s445_s20, %s446_s21  }
   0x9   :  { %s43_s27 = sshll.u32 %s448_s1, 4  ;;  %s44_s27 = int_to_ptr.vmem [resolvable:$true] %s43_s27 }
   0xa   :  { %49 = dma.hbm_to_vmem [thread:$0]  %s42_s26, 1024, %s44_s27, [#allocation6], %s445_s20, %s445_s20, %s446_s21  }
   0xb   :  { %438 = dma.done.wait [#allocation3], 128  }
   0xc   :  { %439 = vsyncadd [#allocation3], 4294967168 }
   0xd   :  { %440 = dma.done.wait [#allocation6], 2048  }
   0xe   :  { %441 = vsyncadd [#allocation6], 4294965248  ;;  %v325_v0 = vld [vmem:[#allocation5 + $0x38] sm:$0xff]  ;;  %v324_v1 = vld [vmem:[#allocation5 + $0x30] sm:$0xff]  ;;  %s449_s0 = smov [#allocation8]   ;;  %s235_s30 = sshll.u32 %s487_s3, 4  ;;  %s236_s30 = int_to_ptr.hbm [resolvable:$true] %s235_s30 }
   0xf   :  { %134 = vmatpush.bf16.msra.mxu0 %v325_v0  ;;  %v333_v2 = vld [vmem:[#allocation7 + $0x38] sm:$0xff]  ;;  %v332_v3 = vld [vmem:[#allocation7 + $0x30] sm:$0xff]  ;;  %v323_v4 = vld [vmem:[#allocation5 + $0x28] sm:$0xff]  ;;  %s233_s2 = sshll.u32 %s449_s0, 4  ;;  %s450_s4 = smov 128   ;;  %s234_s2 = int_to_ptr.vmem [resolvable:$true] %s233_s2 }
  0x10   :  { %213 = vmatpush.bf16.msra.mxu1 %v333_v2  ;;  %v331_v5 = vld [vmem:[#allocation7 + $0x28] sm:$0xff]  ;;  %v322_v6 = vld [vmem:[#allocation5 + $0x20] sm:$0xff]  ;;  %v321_v8 = vld [vmem:[#allocation5 + $0x18] sm:$0xff]  ;;  %s451_s5 = smov 8  }
  0x11   :  { %v330_v7 = vld [vmem:[#allocation7 + $0x20] sm:$0xff]  ;;  %v329_v9 = vld [vmem:[#allocation7 + $0x18] sm:$0xff]  ;;  %v320_v10 = vld [vmem:[#allocation5 + $0x10] sm:$0xff] }
  0x12   :  { %v319_v11 = vld [vmem:[#allocation5 + $0x8] sm:$0xff]  ;;  %v318_v12 = vld [vmem:[#allocation5] sm:$0xff]  ;;  %v317_v13 = vld [vmem:[#allocation2] sm:$0xff] }
  0x13   :  { %135 = vmatpush.bf16.msra.mxu0 %v324_v1  ;;  %v328_v14 = vld [vmem:[#allocation7 + $0x10] sm:$0xff]  ;;  %v327_v15 = vld [vmem:[#allocation7 + $0x8] sm:$0xff]  ;;  %v326_v16 = vld [vmem:[#allocation7] sm:$0xff] }
  0x14   :  { %214 = vmatpush.bf16.msra.mxu1 %v332_v3 }
  0x17   :  { %136 = vmatpush.bf16.msra.mxu0 %v323_v4 }
  0x18   :  { %215 = vmatpush.bf16.msra.mxu1 %v331_v5 }
  0x1b   :  { %137 = vmatpush.bf16.msra.mxu0 %v322_v6 }
  0x1c   :  { %216 = vmatpush.bf16.msra.mxu1 %v330_v7 }
  0x1f   :  { %138 = vmatpush.bf16.msra.mxu0 %v321_v8 }
  0x20   :  { %217 = vmatpush.bf16.msra.mxu1 %v329_v9 }
  0x23   :  { %139 = vmatpush.bf16.msra.mxu0 %v320_v10 }
  0x24   :  { %218 = vmatpush.bf16.msra.mxu1 %v328_v14 }
  0x27   :  { %140 = vmatpush.bf16.msra.mxu0 %v319_v11 }
  0x28   :  { %219 = vmatpush.bf16.msra.mxu1 %v327_v15 }
  0x2b   :  { %141 = vmatpush.bf16.msra.mxu0 %v318_v12 }
  0x2c   :  { %220 = vmatpush.bf16.msra.mxu1 %v326_v16 }
  0x2e   :  { %142 = vmatmul.bf16.vlgmr.msra.gmra.mxu0 %v317_v13 }
  0xab   :  { %v143_v17 = vpop.f32.mrf.mxu0 }
  0xb3   :  { %v145_v18 = vpop.f32.mrf.mxu0 }
  0xb4   :  { %v148_v19 = vpack.c.bf16 %v145_v18, %v143_v17 }
  0xb6   :  { %221 = vmatmul.bf16.vlgmr.msra.gmra.mxu1 %v148_v19 }
 0x133   :  { %v222_v20 = vpop.f32.mrf.mxu1 }
 0x134   :  { %227 = vst [vmem:[#allocation8] sm:$0xff] %v222_v20 }
 0x13b   :  { %v224_v21 = vpop.f32.mrf.mxu1 }
 0x13c   :  { %228 = vst [vmem:[#allocation8 + $0x8] sm:$0xff] %v224_v21 }
 0x13d   :  { %241 = dma.vmem_to_hbm [thread:$0]  %s234_s2, 256, %s236_s30, [#allocation4], %s450_s4, %s450_s4, %s451_s5  }
 0x13e   :  { %442 = dma.done.wait [#allocation4], 256  }
 0x13f   :  { %443 = vsyncadd [#allocation4], 4294967040 }
 0x140   :  { %246 = vsyncpa [#allocation3], 1 }
 0x141   :  { %247 = vsyncpa [#allocation6], 1 }
 0x142   :  { %248 = vsyncpa [#allocation4], 1 }

// kernel: tpu_custom_call.1
= control target key start
LH: loop header
LB: loop body
LE: loop exit
PB: predicated region body
PF: predicated region fallthrough
CT: control target
= control target key end

     0   :  { %8 = vsyncpa [#allocation3], 0  ;;  %s484_s0 = inlined_call_operand.hbm [shape: bf16[16,128], index: 0, kind: input, shape index: {}]   ;;  %s485_s1 = inlined_call_operand.hbm [shape: bf16[128,128], index: 1, kind: input, shape index: {}]   ;;  %s486_s2 = inlined_call_operand.hbm [shape: bf16[128,128], index: 2, kind: input, shape index: {}]   ;;  %s487_s3 = inlined_call_operand.hbm [shape: f32[16,128], index: 3, kind: output, shape index: {}]  }
   0x1   :  { %9 = vsyncpa [#allocation6], 0 }
   0x2   :  { %10 = vsyncpa [#allocation4], 0  ;;  %s28_s14 = sshll.u32 %s485_s1, 4  ;;  %s444_s15 = smov [#allocation5]   ;;  %s29_s14 = int_to_ptr.hbm [resolvable:$true] %s28_s14 }
   0x3   :  { %s30_s16 = sshll.u32 %s444_s15, 4  ;;  %s15_s19 = sshll.u32 %s484_s0, 4  ;;  %s31_s16 = int_to_ptr.vmem [resolvable:$true] %s30_s16  ;;  %s16_s19 = int_to_ptr.hbm [resolvable:$true] %s15_s19 }
   0x4   :  { %s445_s20 = smov 64   ;;  %s446_s21 = smov 4  }
   0x5   :  { %36 = dma.hbm_to_vmem [thread:$0]  %s29_s14, 1024, %s31_s16, [#allocation6], %s445_s20, %s445_s20, %s446_s21  }
   0x6   :  { %s447_s22 = smov [#allocation2]   ;;  %s41_s26 = sshll.u32 %s486_s2, 4  ;;  %s42_s26 = int_to_ptr.hbm [resolvable:$true] %s41_s26 }
   0x7   :  { %s17_s23 = sshll.u32 %s447_s22, 4  ;;  %s448_s1 = smov [#allocation7]   ;;  %s18_s23 = int_to_ptr.vmem [resolvable:$true] %s17_s23 }
   0x8   :  { %23 = dma.hbm_to_vmem [thread:$0]  %s16_s19, 128, %s18_s23, [#allocation3], %s445_s20, %s445_s20, %s446_s21  }
   0x9   :  { %s43_s27 = sshll.u32 %s448_s1, 4  ;;  %s44_s27 = int_to_ptr.vmem [resolvable:$true] %s43_s27 }
   0xa   :  { %49 = dma.hbm_to_vmem [thread:$0]  %s42_s26, 1024, %s44_s27, [#allocation6], %s445_s20, %s445_s20, %s446_s21  }
   0xb   :  { %438 = dma.done.wait [#allocation3], 128  }
   0xc   :  { %439 = vsyncadd [#allocation3], 4294967168 }
   0xd   :  { %440 = dma.done.wait [#allocation6], 2048  }
   0xe   :  { %441 = vsyncadd [#allocation6], 4294965248  ;;  %v325_v0 = vld [vmem:[#allocation5 + $0x38] sm:$0xff]  ;;  %v324_v1 = vld [vmem:[#allocation5 + $0x30] sm:$0xff]  ;;  %s449_s0 = smov [#allocation8]   ;;  %s235_s30 = sshll.u32 %s487_s3, 4  ;;  %s236_s30 = int_to_ptr.hbm [resolvable:$true] %s235_s30 }
   0xf   :  { %134 = vmatpush.bf16.msra.mxu0 %v325_v0  ;;  %v333_v2 = vld [vmem:[#allocation7 + $0x38] sm:$0xff]  ;;  %v332_v3 = vld [vmem:[#allocation7 + $0x30] sm:$0xff]  ;;  %v323_v4 = vld [vmem:[#allocation5 + $0x28] sm:$0xff]  ;;  %s233_s2 = sshll.u32 %s449_s0, 4  ;;  %s450_s4 = smov 128   ;;  %s234_s2 = int_to_ptr.vmem [resolvable:$true] %s233_s2 }
  0x10   :  { %213 = vmatpush.bf16.msra.mxu1 %v333_v2  ;;  %v331_v5 = vld [vmem:[#allocation7 + $0x28] sm:$0xff]  ;;  %v322_v6 = vld [vmem:[#allocation5 + $0x20] sm:$0xff]  ;;  %v321_v8 = vld [vmem:[#allocation5 + $0x18] sm:$0xff]  ;;  %s451_s5 = smov 8  }
  0x11   :  { %v330_v7 = vld [vmem:[#allocation7 + $0x20] sm:$0xff]  ;;  %v329_v9 = vld [vmem:[#allocation7 + $0x18] sm:$0xff]  ;;  %v320_v10 = vld [vmem:[#allocation5 + $0x10] sm:$0xff] }
  0x12   :  { %v319_v11 = vld [vmem:[#allocation5 + $0x8] sm:$0xff]  ;;  %v318_v12 = vld [vmem:[#allocation5] sm:$0xff]  ;;  %v317_v13 = vld [vmem:[#allocation2] sm:$0xff] }
  0x13   :  { %135 = vmatpush.bf16.msra.mxu0 %v324_v1  ;;  %v328_v14 = vld [vmem:[#allocation7 + $0x10] sm:$0xff]  ;;  %v327_v15 = vld [vmem:[#allocation7 + $0x8] sm:$0xff]  ;;  %v326_v16 = vld [vmem:[#allocation7] sm:$0xff] }
  0x14   :  { %214 = vmatpush.bf16.msra.mxu1 %v332_v3 }
  0x17   :  { %136 = vmatpush.bf16.msra.mxu0 %v323_v4 }
  0x18   :  { %215 = vmatpush.bf16.msra.mxu1 %v331_v5 }
  0x1b   :  { %137 = vmatpush.bf16.msra.mxu0 %v322_v6 }
  0x1c   :  { %216 = vmatpush.bf16.msra.mxu1 %v330_v7 }
  0x1f   :  { %138 = vmatpush.bf16.msra.mxu0 %v321_v8 }
  0x20   :  { %217 = vmatpush.bf16.msra.mxu1 %v329_v9 }
  0x23   :  { %139 = vmatpush.bf16.msra.mxu0 %v320_v10 }
  0x24   :  { %218 = vmatpush.bf16.msra.mxu1 %v328_v14 }
  0x27   :  { %140 = vmatpush.bf16.msra.mxu0 %v319_v11 }
  0x28   :  { %219 = vmatpush.bf16.msra.mxu1 %v327_v15 }
  0x2b   :  { %141 = vmatpush.bf16.msra.mxu0 %v318_v12 }
  0x2c   :  { %220 = vmatpush.bf16.msra.mxu1 %v326_v16 }
  0x2e   :  { %142 = vmatmul.bf16.vlgmr.msra.gmra.mxu0 %v317_v13 }
  0xab   :  { %v143_v17 = vpop.f32.mrf.mxu0 }
  0xb3   :  { %v145_v18 = vpop.f32.mrf.mxu0 }
  0xb4   :  { %v148_v19 = vpack.c.bf16 %v145_v18, %v143_v17 }
  0xb6   :  { %221 = vmatmul.bf16.vlgmr.msra.gmra.mxu1 %v148_v19 }
 0x133   :  { %v222_v20 = vpop.f32.mrf.mxu1 }
 0x134   :  { %227 = vst [vmem:[#allocation8] sm:$0xff] %v222_v20 }
 0x13b   :  { %v224_v21 = vpop.f32.mrf.mxu1 }
 0x13c   :  { %228 = vst [vmem:[#allocation8 + $0x8] sm:$0xff] %v224_v21 }
 0x13d   :  { %241 = dma.vmem_to_hbm [thread:$0]  %s234_s2, 256, %s236_s30, [#allocation4], %s450_s4, %s450_s4, %s451_s5  }
 0x13e   :  { %442 = dma.done.wait [#allocation4], 256  }
 0x13f   :  { %443 = vsyncadd [#allocation4], 4294967040 }
 0x140   :  { %246 = vsyncpa [#allocation3], 1 }
 0x141   :  { %247 = vsyncpa [#allocation6], 1 }
 0x142   :  { %248 = vsyncpa [#allocation4], 1 }

</bundles_post_ra>
